<compile_context>
chip_gen: v6e
topology: v6e:2x2x1
jax: 0.10.0
libtpu: 0.0.40
codegen_flags: <defaults>
</compile_context>

<pallas_src>
import jax
import jax.numpy as jnp
from jax import lax
from jax.experimental import pallas as pl
from jax.experimental.pallas import tpu as pltpu


def _cdiv(a, b):
    return (a + b - 1) // b


def _round_up(v, m):
    return ((v + m - 1) // m) * m


def _default_vmem_limit_bytes():
    """Generation-aware scoped-VMEM limit with headroom.

    v5e/v6e: 128 MiB physical -> 96 MiB; v7x: 64 MiB per core -> 48 MiB.
    Falls back to the smallest (v7x-sized) figure if the query is unavailable.
    """
    phys = None
    try:
        info = pltpu.get_tpu_info()
        phys = getattr(info, "vmem_capacity_bytes", None)
    except Exception:
        phys = None
    if not phys or phys <= 0:
        phys = 64 << 20
    return max(16 << 20, min((phys * 3) // 4, phys - (16 << 20), 96 << 20))


# ---------------------------------------------------------------------------
# Fused path: everything resident in VMEM, U read from HBM once.
# ---------------------------------------------------------------------------
def _make_fused_kernel(apply_w_first: bool):
    def kernel(u_ref, x_ref, wt_ref, o_ref):
        u = u_ref[...]
        if apply_w_first:
            rhs = jnp.dot(x_ref[...], wt_ref[...],
                          preferred_element_type=jnp.float32)
        else:
            rhs = x_ref[...]
        # Contract the node (row) axes of U and rhs directly on the MXU
        # (native transposed-LHS feed; no transposed copy of U materialized).
        h = lax.dot_general(u, rhs,
                            dimension_numbers=(((0,), (0,)), ((), ())),
                            preferred_element_type=jnp.float32)
        if not apply_w_first:
            h = jnp.dot(h, wt_ref[...], preferred_element_type=jnp.float32)
        o_ref[...] = jnp.dot(u, h,
                             preferred_element_type=jnp.float32).astype(o_ref.dtype)

    return kernel


# ---------------------------------------------------------------------------
# Two-phase tiled path.
# ---------------------------------------------------------------------------
def _make_phase1_kernel(apply_w_first: bool, tile_rows: int, n_rows: int):
    """H[j-slice] = (U[:, j-slice]^T @ x) @ W^T, accumulated over N-row tiles."""
    needs_mask = (n_rows % tile_rows) != 0

    def body(u_ref, x_ref, wt_ref, h_ref, acc_ref):
        i = pl.program_id(1)                # reduction axis (row tiles), last

        u = u_ref[...]
        xv = x_ref[...]
        if needs_mask:
            # Ragged last tile: out-of-bounds VMEM rows contain garbage, so
            # zero them out before they can enter the reduction.
            rem = n_rows - i * tile_rows
            valid = lax.broadcasted_iota(jnp.int32, (tile_rows, 1), 0) < rem
            u = jnp.where(valid, u, jnp.zeros_like(u))
            xv = jnp.where(valid, xv, jnp.zeros_like(xv))

        @pl.when(i == 0)
        def _():
            acc_ref[...] = jnp.zeros_like(acc_ref)

        rhs = (jnp.dot(xv, wt_ref[...], preferred_element_type=jnp.float32)
               if apply_w_first else xv)
        acc_ref[...] += lax.dot_general(
            u, rhs, dimension_numbers=(((0,), (0,)), ((), ())),
            preferred_element_type=jnp.float32)

        if not apply_w_first:
            @pl.when(i == pl.num_programs(1) - 1)
            def _():
                h_ref[...] = jnp.dot(acc_ref[...], wt_ref[...],
                                     preferred_element_type=jnp.float32)

    if apply_w_first:
        # Accumulate directly into the resident f32 output block; no scratch.
        def kernel(u_ref, x_ref, wt_ref, h_ref):
            body(u_ref, x_ref, wt_ref, h_ref, h_ref)
        return kernel
    return body


def _phase2_kernel(u_ref, h_ref, o_ref):
    # out_tile = U_tile @ H : [tile_n, K] @ [K, C_out]; rows are independent,
    # so garbage rows in a ragged last tile only produce out-of-bounds output
    # rows, which the pipeline discards.
    o_ref[...] = jnp.dot(u_ref[...], h_ref[...],
                         preferred_element_type=jnp.float32).astype(o_ref.dtype)


def _pick_tile_rows(n_rows, row_stream_bytes, vmem_limit, resident_bytes,
                    target_step_bytes, min_tiles=1):
    """Row tile sized by streamed bytes per grid step (double-buffered),
    bounded by the scoped-VMEM budget; multiple of 8."""
    budget = max(vmem_limit - resident_bytes - (4 << 20), 1 << 20)
    max_rows = max(8, budget // (2 * row_stream_bytes))
    rows = min(target_step_bytes // row_stream_bytes, max_rows)
    rows = min(rows, _round_up(_cdiv(n_rows, max(min_tiles, 1)), 8))
    rows = min(rows, _round_up(n_rows, 8))
    return max(8, (rows // 8) * 8)


def _spec_conv_two_phase(x, U, W_t, apply_w_first, out_dtype, vmem_limit,
                         target_step_bytes):
    N, C_in = x.shape
    K = U.shape[1]
    C_out = W_t.shape[1]

    # Split U's K columns into two "parallel" blocks when the lane constraint
    # allows it (K/2 multiple of 128) so v7x can shard phase 1 over both TCs.
    ksplit = 2 if (K >= 256 and K % 256 == 0) else 1
    k_blk = K // ksplit

    resident1 = 4 * (C_in * C_out + K * C_out + k_blk * max(C_in, C_out))
    tile1 = _pick_tile_rows(N, 4 * (k_blk + C_in), vmem_limit, resident1,
                            target_step_bytes)
    num_tiles1 = _cdiv(N, tile1)

    resident2 = 4 * (K * C_out)
    tile2 = _pick_tile_rows(N, 4 * (K + C_out), vmem_limit, resident2,
                            target_step_bytes, min_tiles=2)
    num_tiles2 = _cdiv(N, tile2)

    phase1_scratch = () if apply_w_first else (
        pltpu.VMEM((k_blk, C_in), jnp.float32),)

    # ---- Phase 1: H = (U^T x) W^T, reduction over row tiles ----------------
    h = pl.pallas_call(
        _make_phase1_kernel(apply_w_first, tile1, N),
        out_shape=jax.ShapeDtypeStruct((K, C_out), jnp.float32),
        grid_spec=pltpu.PrefetchScalarGridSpec(
            num_scalar_prefetch=0,
            grid=(ksplit, num_tiles1),
            in_specs=[
                pl.BlockSpec((tile1, k_blk), lambda j, i: (i, j)),   # U tile
                pl.BlockSpec((tile1, C_in), lambda j, i: (i, 0)),    # x tile
                pl.BlockSpec((C_in, C_out), lambda j, i: (0, 0)),    # W^T
            ],
            out_specs=pl.BlockSpec((k_blk, C_out), lambda j, i: (j, 0)),
            scratch_shapes=phase1_scratch,
        ),
        compiler_params=pltpu.CompilerParams(
            dimension_semantics=("parallel", "arbitrary"),
            vmem_limit_bytes=vmem_limit),
    )(U, x, W_t)

    # ---- Phase 2: out = U @ H, independent row tiles ------------------------
    out = pl.pallas_call(
        _phase2_kernel,
        out_shape=jax.ShapeDtypeStruct((N, C_out), out_dtype),
        grid_spec=pltpu.PrefetchScalarGridSpec(
            num_scalar_prefetch=0,
            grid=(num_tiles2,),
            in_specs=[
                pl.BlockSpec((tile2, K), lambda i: (i, 0)),          # U tile
                pl.BlockSpec((K, C_out), lambda i: (0, 0)),          # H resident
            ],
            out_specs=pl.BlockSpec((tile2, C_out), lambda i: (i, 0)),
        ),
        compiler_params=pltpu.CompilerParams(
            dimension_semantics=("parallel",),
            vmem_limit_bytes=vmem_limit),
    )(U, h)
    return out


# ---------------------------------------------------------------------------
# Public entry point.
# ---------------------------------------------------------------------------
def spec_conv(x, U, W, *, vmem_limit_bytes=None, force_two_phase=False,
              target_step_bytes=4 << 20):
    """SpecConv forward: out = U @ ((U.T @ x) @ W.T).

    x: [N, C_in], U: [N, K], W: [C_out, C_in] -> [N, C_out]
    """
    N, C_in = x.shape
    N_u, K = U.shape
    assert N_u == N, "U rows must match number of nodes"
    C_out, C_in_w = W.shape
    assert C_in_w == C_in

    out_dtype = x.dtype
    W_t = W.T.astype(jnp.float32)                      # [C_in, C_out]
    apply_w_first = C_out < C_in
    vmem_limit = int(vmem_limit_bytes or _default_vmem_limit_bytes())

    # Fused U-resident path: U is the dominant HBM stream; keeping it resident
    # reads it once instead of twice. Factor 2 covers in-kernel temporaries.
    fused_bytes = 4 * (N * K + N * (C_in + C_out)
                       + C_in * C_out + K * (C_in + C_out))
    if (not force_two_phase) and (2 * fused_bytes + (2 << 20) <= vmem_limit):
        return pl.pallas_call(
            _make_fused_kernel(apply_w_first),
            out_shape=jax.ShapeDtypeStruct((N, C_out), out_dtype),
            compiler_params=pltpu.CompilerParams(vmem_limit_bytes=vmem_limit),
        )(U, x, W_t)

    return _spec_conv_two_phase(x, U, W_t, apply_w_first, out_dtype,
                                vmem_limit, target_step_bytes)


def glorot_uniform(key, shape, dtype=jnp.float32):
    # torch_geometric 'glorot': uniform(-a, a), a = sqrt(6 / (fan_in + fan_out))
    fan_out, fan_in = shape
    a = jnp.sqrt(6.0 / (fan_in + fan_out))
    return jax.random.uniform(key, shape, dtype=dtype, minval=-a, maxval=a)


def _ref(x, U, W):
    return U @ ((U.T @ x) @ W.T)


if __name__ == "__main__":
    root = jax.random.PRNGKey(0)
    keys = jax.random.split(root, 12)

    # 1) Small case matching the module's intended shapes (fused path).
    N, C_in, C_out = 16, 4, 8
    K = N
    x = jax.random.normal(keys[0], (N, C_in), dtype=jnp.float32)
    U = jax.random.normal(keys[1], (N, K), dtype=jnp.float32)
    W = glorot_uniform(keys[2], (C_out, C_in))
    out = spec_conv(x, U, W)
    jax.block_until_ready(out)
    assert out.shape == (N, C_out)
    assert jnp.allclose(out, _ref(x, U, W), atol=1e-4, rtol=1e-4), "fused small"

    # 2) Medium case, apply-W-first association, still fused (U ~1 MiB).
    N2, K2, C_in2, C_out2 = 1024, 256, 32, 16
    x2 = jax.random.normal(keys[3], (N2, C_in2), dtype=jnp.float32)
    U2 = jax.random.normal(keys[4], (N2, K2), dtype=jnp.float32) / jnp.sqrt(N2)
    W2 = glorot_uniform(keys[5], (C_out2, C_in2))
    out2 = spec_conv(x2, U2, W2)
    jax.block_until_ready(out2)
    assert out2.shape == (N2, C_out2)
    assert jnp.allclose(out2, _ref(x2, U2, W2), atol=1e-3, rtol=1e-3), "fused med"

    # 3) Two-phase path forced (apply-W-last, C_out >= C_in): exercises the
    #    K-split parallel axis, ragged cdiv grids and in-kernel tail masking.
    N3, K3, C_in3, C_out3 = 1000, 256, 8, 32
    x3 = jax.random.normal(keys[6], (N3, C_in3), dtype=jnp.float32)
    U3 = jax.random.normal(keys[7], (N3, K3), dtype=jnp.float32) / jnp.sqrt(N3)
    W3 = glorot_uniform(keys[8], (C_out3, C_in3))
    out3 = spec_conv(x3, U3, W3, force_two_phase=True,
                     target_step_bytes=96 * 1024)
    jax.block_until_ready(out3)
    assert out3.shape == (N3, C_out3)
    assert jnp.allclose(out3, _ref(x3, U3, W3), atol=2e-3, rtol=2e-3), "tiled A"

    # 4) Two-phase path forced, apply-W-first, N not a multiple of 8
    #    (direct accumulation into the resident H block, no scratch).
    N4, K4, C_in4, C_out4 = 777, 256, 32, 8
    x4 = jax.random.normal(keys[9], (N4, C_in4), dtype=jnp.float32)
    U4 = jax.random.normal(keys[10], (N4, K4), dtype=jnp.float32) / jnp.sqrt(N4)
    W4 = glorot_uniform(keys[11], (C_out4, C_in4))
    out4 = spec_conv(x4, U4, W4, force_two_phase=True,
                     target_step_bytes=96 * 1024)
    jax.block_until_ready(out4)
    assert out4.shape == (N4, C_out4)
    assert jnp.allclose(out4, _ref(x4, U4, W4), atol=2e-3, rtol=2e-3), "tiled B"

    print("KERNEL_OK")
</pallas_src>

<mosaic_0001>
module attributes {stable_mosaic.version = 11 : i64} {
  func.func @kernel(%arg0: memref<16x16xf32, #tpu.memory_space<vmem>>, %arg1: memref<16x4xf32, #tpu.memory_space<vmem>>, %arg2: memref<4x8xf32, #tpu.memory_space<vmem>>, %arg3: memref<16x8xf32, #tpu.memory_space<vmem>>) attributes {dimension_semantics = [], scalar_prefetch = 0 : i64, scratch_operands = 0 : i64, tpu.core_type = #tpu.core_type<tc>} {
    %c0 = arith.constant 0 : index
    %c0_0 = arith.constant 0 : index
    %0 = vector.load %arg0[%c0, %c0_0] : memref<16x16xf32, #tpu.memory_space<vmem>>, vector<16x16xf32>
    %c0_1 = arith.constant 0 : index
    %c0_2 = arith.constant 0 : index
    %1 = vector.load %arg1[%c0_1, %c0_2] : memref<16x4xf32, #tpu.memory_space<vmem>>, vector<16x4xf32>
    %cst = arith.constant dense<0.000000e+00> : vector<16x4xf32>
    %2 = tpu.matmul %0, %1, %cst {dimension_numbers = #tpu.dot_dimension_numbers<[0], [0], [1], [1], [0, 1, 1, 1], [], []>} : vector<16x16xf32>, vector<16x4xf32>, vector<16x4xf32> -> vector<16x4xf32>
    %c0_3 = arith.constant 0 : index
    %c0_4 = arith.constant 0 : index
    %3 = vector.load %arg2[%c0_3, %c0_4] : memref<4x8xf32, #tpu.memory_space<vmem>>, vector<4x8xf32>
    %cst_5 = arith.constant dense<0.000000e+00> : vector<16x8xf32>
    %4 = tpu.matmul %2, %3, %cst_5 {dimension_numbers = #tpu.dot_dimension_numbers<[1], [0], [0], [1], [0, 0, 1, 1], [], []>} : vector<16x4xf32>, vector<4x8xf32>, vector<16x8xf32> -> vector<16x8xf32>
    %cst_6 = arith.constant dense<0.000000e+00> : vector<16x8xf32>
    %5 = tpu.matmul %0, %4, %cst_6 {dimension_numbers = #tpu.dot_dimension_numbers<[1], [0], [0], [1], [0, 0, 1, 1], [], []>} : vector<16x16xf32>, vector<16x8xf32>, vector<16x8xf32> -> vector<16x8xf32>
    %c0_7 = arith.constant 0 : index
    %c0_8 = arith.constant 0 : index
    %6 = vector.load %arg3[%c0_7, %c0_8] : memref<16x8xf32, #tpu.memory_space<vmem>>, vector<16x8xf32>
    tpu.vector_store %arg3[%c0_7, %c0_8], %5 {strides = array<i32>} : memref<16x8xf32, #tpu.memory_space<vmem>>, vector<16x8xf32>,
    return
  }
}

</mosaic_0001>

<bundles_post_ra>
// kernel: tpu_custom_call.1
= control target key start
LH: loop header
LB: loop body
LE: loop exit
PB: predicated region body
PF: predicated region fallthrough
CT: control target
= control target key end

     0   :  { %vm50_vm0 = vcmask 130048   ;;  %vm140_vm1 = vcmask 1043456   ;;  %vm133_vm2 = vcmask 31744   ;;  %vm300_vm3 = vcmask 64512   ;;  %s390_s0 = inlined_call_operand.vmem [shape: f32[16,16], index: 0, kind: input, shape index: {}]   ;;  %s391_s1 = inlined_call_operand.vmem [shape: f32[16,4], index: 1, kind: input, shape index: {}]   ;;  %s392_s2 = inlined_call_operand.vmem [shape: f32[4,8], index: 2, kind: input, shape index: {}]   ;;  %s393_s3 = inlined_call_operand.vmem [shape: f32[16,8], index: 3, kind: output, shape index: {}]  }
   0x1   :  { %v14_v0 = vld [vmem:[%s390_s0] sm:$0xff]  ;;  %v17_v1 = vld [vmem:[%s391_s1 + $0x8] sm:$0xff] }
   0x2   :  { %18 = vxpose.xlu0.b32.start [1/2] (short) (narrow) %v14_v0, 16  ;;  %325 = vmatprep.subr.mxu0 %v17_v1  ;;  %v16_v2 = vld [vmem:[%s391_s1] sm:$0xff]  ;;  %v15_v3 = vld [vmem:[%s390_s0 + $0x8] sm:$0xff] }
   0x3   :  { %326 = vmatpush3.msra.mxu0 %v17_v1  ;;  %v132_v6 = vld [vmem:[%s392_s2] sm:$0xf] }
   0x4   :  { %327 = vmatprep.subr.mxu0 %v16_v2  ;;  %332 = vmatprep.subr.msk.mxu1 %vm140_vm1, %v132_v6 }
   0x5   :  { %328 = vmatpush3.msra.mxu0 %v16_v2  ;;  %333 = vmatpush3.msk.msra.mxu1 %vm140_vm1, %v132_v6 }
   0x6   :  { %19 = vxpose.xlu0.b32.end [2/2] (short) (narrow) %v15_v3, 16 }
  0x7e   :  { %v34_v4 = vpop.trf.xlu0 }
  0x7f   :  { %329 = vmatprep.mubr.msk.f32.mxu0 %vm50_vm0, %v34_v4 }
  0x82   :  { %v35_v5 = vpop.trf.xlu0 }
  0x83   :  { %330 = vmatmul.mubr.msk.f32.vlgmr.msra.gmra.mxu0 %vm50_vm0, %v35_v5 }
 0x143   :  { %v331_v7 = vpop.f32.mrf.mxu0 }
 0x145   :  { %v123_v8 = vpop.f32.mrf.mxu0 }
 0x146   :  { %334 = vmatprep.mubr.msk.f32.mxu1 %vm133_vm2, %v123_v8 }
 0x147   :  { %335 = vmatmul.mubr.msk.f32.vlgmr.msra.gmra.mxu1 %vm133_vm2, %v331_v7 }
 0x148   :  { %341 = vmatprep.mubr.msk.f32.mxu1 %vm50_vm0, %v14_v0 }
 0x207   :  { %v336_v9 = vpop.f32.mrf.mxu1 }
 0x208   :  { %337 = vmatprep.subr.mxu1 %v336_v9 }
 0x209   :  { %v210_v10 = vpop.f32.mrf.mxu1  ;;  %338 = vmatpush3.msra.mxu1 %v336_v9 }
 0x20a   :  { %339 = vmatprep.subr.mxu1 %v210_v10 }
 0x20b   :  { %340 = vmatpush3.msra.mxu1 %v210_v10 }
 0x20c   :  { %342 = vmatmul.mubr.msk.f32.vlgmr.msra.gmra.mxu1 %vm50_vm0, %v15_v3 }
 0x2cc   :  { %v343_v11 = vpop.f32.mrf.mxu1 }
 0x2cd   :  { %302 = vst.msk [vmem:[%s393_s3 + $0x8] sm:$0xff] %vm300_vm3, %v343_v11 }
 0x2ce   :  { %v291_v12 = vpop.f32.mrf.mxu1 }
 0x2cf   :  { %301 = vst.msk [vmem:[%s393_s3] sm:$0xff] %vm300_vm3, %v291_v12 }

</bundles_post_ra>
